<compile_context>
chip_gen: v5e
topology: v5e:2x2
jax: 0.10.0
libtpu: 0.0.40
codegen_flags: <defaults>
</compile_context>

<pallas_src>
import math

import jax
import jax.numpy as jnp
from jax.experimental import pallas as pl
from jax.experimental.pallas import tpu as pltpu


def _cdiv(a, b):
    return (a + b - 1) // b


def _round_up(x, m):
    return _cdiv(x, m) * m


def _build_kernel(tile_b, chunk_sizes, K, D, dma_unroll):
    """Builds the per-tile kernel.

    Kernel args (PrefetchScalarGridSpec, num_scalar_prefetch=1):
      uid_ref  : SMEM (b_pad,) int32       -- scalar-prefetched user ids
      ua_hbm   : ANY  (num_users, 2*K*D)   -- merged [taste | attention] table (HBM)
      item_ref : VMEM (tile_b, D)          -- XLA-gathered item rows for this tile
      out_ref  : VMEM (tile_b, 1)          -- dot(weighted_preference, item)
      ua_buf   : VMEM (2, chunk_max, 2*K*D) scratch (double-buffered gather dst)
      sem      : DMA semaphores (2,)
    """
    KD = K * D
    offs = []
    o = 0
    for cs in chunk_sizes:
        offs.append(o)
        o += cs
    assert o == tile_b

    def kernel(uid_ref, ua_hbm, item_ref, out_ref, ua_buf, sem):
        row0 = pl.program_id(0) * tile_b            # first batch row of this tile

        def start_gather(chunk_off, rows, slot):
            base = row0 + chunk_off
            u = math.gcd(dma_unroll, rows)

            @pl.loop(0, rows, step=u)
            def _(r):
                for j in range(u):
                    uid = uid_ref[base + r + j]
                    pltpu.make_async_copy(
                        ua_hbm.at[uid], ua_buf.at[slot, r + j], sem.at[slot]
                    ).start()

        def wait_gather(rows, slot):
            u = math.gcd(dma_unroll, rows)

            @pl.loop(0, rows, step=u)
            def _(r):
                for j in range(u):
                    # Dummy src: only dst shape + semaphore matter for wait().
                    pltpu.make_async_copy(
                        ua_hbm.at[0], ua_buf.at[slot, r + j], sem.at[slot]
                    ).wait()

        def compute_chunk(chunk_off, rows, slot):
            item = item_ref[pl.ds(chunk_off, rows), :]        # (rows, D) f32
            ua = ua_buf[slot, pl.ds(0, rows), :]              # (rows, 2*K*D) f32
            taste = ua[:, :KD]
            attn = ua[:, KD:]

            # Per-component attention logits and taste.item dot products
            # (K static lane-segment reductions; the VALU/XLU work is fully
            # hidden under the gather DMAs).
            logits = [
                jnp.sum(attn[:, k * D:(k + 1) * D] * item, axis=1, keepdims=True)
                for k in range(K)
            ]
            tdots = [
                jnp.sum(taste[:, k * D:(k + 1) * D] * item, axis=1, keepdims=True)
                for k in range(K)
            ]

            # out = sum_k softmax_k(logits) * tdot_k, algebraically fused:
            # the (rows, D) weighted-preference vector is never materialized.
            m = logits[0]
            for k in range(1, K):
                m = jnp.maximum(m, logits[k])
            num = jnp.zeros((rows, 1), jnp.float32)
            den = jnp.zeros((rows, 1), jnp.float32)
            for k in range(K):
                e = jnp.exp(logits[k] - m)
                den = den + e
                num = num + e * tdots[k]
            out_ref[pl.ds(chunk_off, rows), :] = num / den

        # Chunked gather/compute pipeline.  All control flow is static Python,
        # no state is carried across grid iterations, so the grid axis is safe
        # to mark "parallel" for megacore sharding.
        n_chunks = len(chunk_sizes)
        start_gather(offs[0], chunk_sizes[0], 0)
        for c in range(n_chunks):
            slot = c % 2
            if c + 1 < n_chunks:                      # prefetch next chunk's rows
                start_gather(offs[c + 1], chunk_sizes[c + 1], 1 - slot)
            wait_gather(chunk_sizes[c], slot)
            compute_chunk(offs[c], chunk_sizes[c], slot)

    return kernel


def embedding_mixture_forward(params, user_ids, item_ids, num_components,
                              *, max_tile_b=2048, chunk_rows=512, dma_unroll=8):
    """Pallas forward pass.  Returns (B,) float32 scores."""
    item_table = params["item_embeddings"]
    ua_table = params["user_mixture_embeddings"]       # (num_users, 2*K*D)
    D = item_table.shape[1]
    K = num_components
    KD = K * D
    assert ua_table.shape[1] == 2 * KD

    B = user_ids.shape[0]

    # Tiling: minimize padding; keep 2..4 tiles when the batch is big enough so
    # the "parallel" grid axis can be sharded across v7x's two TensorCores.
    n_tiles = max(_cdiv(B, max_tile_b), min(4, _cdiv(B, 256)))
    tile_b = _round_up(_cdiv(B, n_tiles), 8)
    n_tiles = _cdiv(B, tile_b)
    b_pad = n_tiles * tile_b

    user_ids = user_ids.astype(jnp.int32)
    item_ids = item_ids.astype(jnp.int32)
    if b_pad != B:
        pad = b_pad - B
        user_ids_p = jnp.concatenate([user_ids, jnp.zeros((pad,), jnp.int32)])
        item_ids_p = jnp.concatenate([item_ids, jnp.zeros((pad,), jnp.int32)])
    else:
        user_ids_p, item_ids_p = user_ids, item_ids

    # Tiny per-row payloads stay with XLA (per review): item rows are gathered
    # here; biases are added to the final (B,) output below (never enter VMEM).
    item_rows = item_table[item_ids_p]                  # (b_pad, D) f32

    # Static intra-tile gather chunks (each a multiple of 8 rows).
    chunk_sizes = []
    left = tile_b
    while left > 0:
        cs = min(chunk_rows, left)
        chunk_sizes.append(cs)
        left -= cs
    chunk_max = max(chunk_sizes)

    kernel = _build_kernel(tile_b, tuple(chunk_sizes), K, D, dma_unroll)

    out = pl.pallas_call(
        kernel,
        out_shape=jax.ShapeDtypeStruct((b_pad, 1), jnp.float32),
        grid_spec=pltpu.PrefetchScalarGridSpec(
            num_scalar_prefetch=1,                      # user_ids -> SMEM
            grid=(n_tiles,),
            in_specs=[
                pl.BlockSpec(memory_space=pl.ANY),      # merged user table (HBM)
                pl.BlockSpec((tile_b, D), lambda i, uid: (i, 0)),
            ],
            out_specs=pl.BlockSpec((tile_b, 1), lambda i, uid: (i, 0)),
            scratch_shapes=[
                pltpu.VMEM((2, chunk_max, 2 * KD), jnp.float32),
                pltpu.SemaphoreType.DMA((2,)),
            ],
        ),
        compiler_params=pltpu.CompilerParams(
            dimension_semantics=("parallel",)),
    )(user_ids_p, ua_table, item_rows)

    dot = out[:B, 0]
    bias = (params["user_biases"][user_ids][:, 0]
            + params["item_biases"][item_ids][:, 0])
    return dot + bias


def init_params(key, num_users, num_items, embedding_dim=32, num_components=4):
    D, K = embedding_dim, num_components
    KD = D * K
    k1, k2, k3 = jax.random.split(key, 3)
    # ScaledEmbedding: normal(0, 1/emb_dim_of_table); ZeroEmbedding: zeros.
    taste = jax.random.normal(k1, (num_users, KD), jnp.float32) / KD
    attention = jax.random.normal(k2, (num_users, KD), jnp.float32) / KD
    return {
        # taste + attention merged into one table so the in-kernel gather issues
        # a single 2*K*D-wide DMA per user id: [:, :K*D]=taste, [:, K*D:]=attention.
        "user_mixture_embeddings": jnp.concatenate([taste, attention], axis=1),
        "item_embeddings":
            jax.random.normal(k3, (num_items, D), jnp.float32) / D,
        "user_biases": jnp.zeros((num_users, 1), jnp.float32),
        "item_biases": jnp.zeros((num_items, 1), jnp.float32),
    }


def reference_forward(params, user_ids, item_ids, num_components):
    D = params["item_embeddings"].shape[1]
    K = num_components
    KD = K * D
    ua = params["user_mixture_embeddings"][user_ids]
    tastes = ua[:, :KD].reshape(-1, K, D)
    attn = ua[:, KD:].reshape(-1, K, D)
    item = params["item_embeddings"][item_ids]
    logits = jnp.sum(attn * item[:, None, :], axis=2)
    a = jax.nn.softmax(logits, axis=1)
    weighted = jnp.sum(tastes * a[:, :, None], axis=1)
    dot = jnp.sum(weighted * item, axis=1)
    return (dot
            + params["user_biases"][user_ids][:, 0]
            + params["item_biases"][item_ids][:, 0])


if __name__ == "__main__":
    num_users, num_items = 10, 15
    embedding_dim, num_components = 32, 4

    key = jax.random.PRNGKey(0)
    kp, ku, ki = jax.random.split(key, 3)
    params = init_params(kp, num_users, num_items, embedding_dim, num_components)

    def check(batch, **kw):
        u = jax.random.randint(ku, (batch,), 0, num_users)
        it = jax.random.randint(ki, (batch,), 0, num_items)
        out = jax.block_until_ready(
            embedding_mixture_forward(params, u, it, num_components, **kw))
        ref = reference_forward(params, u, it, num_components)
        assert out.shape == (batch,)
        assert jnp.allclose(out, ref, atol=1e-5, rtol=1e-5), (
            "mismatch at batch=%d, max abs err=%s"
            % (batch, jnp.max(jnp.abs(out - ref))))

    # Single tile, single gather chunk (tile_b == batch == 8).
    check(8)
    # Ragged batch -> id padding path.
    check(5)
    # Multi-tile + multi-chunk path: 2 parallel tiles of 152 rows, gather chunks
    # of 64/64/24 rows per tile (exercises the double-buffered gather pipeline).
    check(300, chunk_rows=64)

    print("KERNEL_OK")
</pallas_src>

<mosaic_0001>
module attributes {stable_mosaic.version = 11 : i64} {
  func.func @kernel(%arg0: i32, %arg1: memref<8xi32, #tpu.memory_space<smem>>, %arg2: memref<10x256xf32, #tpu.memory_space<any>>, %arg3: memref<8x32xf32, #tpu.memory_space<vmem>>, %arg4: memref<8x1xf32, #tpu.memory_space<vmem>>, %arg5: memref<2x8x256xf32, #tpu.memory_space<vmem>>, %arg6: memref<2x!tpu.dma_semaphore, #tpu.memory_space<semaphore_mem>>) attributes {dimension_semantics = [#tpu.dimension_semantics<parallel>], iteration_bounds = array<i64: 1>, scalar_prefetch = 1 : i64, scratch_operands = 2 : i64, tpu.core_type = #tpu.core_type<tc>, window_params = [{}, {transform_indices = @transform_1, window_bounds = array<i64: 8, 32>}, {transform_indices = @transform_2, window_bounds = array<i64: 8, 1>}]} {
    %c8_i32 = arith.constant 8 : i32
    %0 = arith.muli %arg0, %c8_i32 : i32
    %c0_i32 = arith.constant 0 : i32
    %1 = arith.addi %0, %c0_i32 : i32
    %c0_i32_0 = arith.constant 0 : i32
    %c8_i32_1 = arith.constant 8 : i32
    %2 = arith.muli %c0_i32_0, %c8_i32_1 : i32
    %c0_i32_2 = arith.constant 0 : i32
    %3 = arith.addi %c0_i32_2, %2 : i32
    %4 = arith.addi %1, %3 : i32
    %c0_i32_3 = arith.constant 0 : i32
    %5 = arith.addi %4, %c0_i32_3 : i32
    %6 = arith.index_cast %5 : i32 to index
    %7 = memref.load %arg1[%6] : memref<8xi32, #tpu.memory_space<smem>>
    %c0_i32_4 = arith.constant 0 : i32
    %8 = arith.addi %3, %c0_i32_4 : i32
    %c0_i32_5 = arith.constant 0 : i32
    %c0_i32_6 = arith.constant 0 : i32
    %c0_i32_7 = arith.constant 0 : i32
    %9 = tpu.memref_slice %arg2[%7, %c0_i32_7] : memref<10x256xf32, #tpu.memory_space<any>> -> memref<1x256xf32, #tpu.memory_space<any>>
    %10 = tpu.memref_squeeze %9 : memref<1x256xf32, #tpu.memory_space<any>> -> memref<256xf32, #tpu.memory_space<any>>
    %c0_i32_8 = arith.constant 0 : i32
    %11 = tpu.memref_slice %arg5[%c0_i32_5, %8, %c0_i32_8] : memref<2x8x256xf32, #tpu.memory_space<vmem>> -> memref<1x1x256xf32, #tpu.memory_space<vmem>>
    %12 = tpu.memref_squeeze %11 : memref<1x1x256xf32, #tpu.memory_space<vmem>> -> memref<256xf32, #tpu.memory_space<vmem>>
    %13 = tpu.memref_slice %arg6[%c0_i32_6] : memref<2x!tpu.dma_semaphore, #tpu.memory_space<semaphore_mem>> -> memref<1x!tpu.dma_semaphore, #tpu.memory_space<semaphore_mem>>
    %14 = tpu.memref_squeeze %13 : memref<1x!tpu.dma_semaphore, #tpu.memory_space<semaphore_mem>> -> memref<!tpu.dma_semaphore, #tpu.memory_space<semaphore_mem>>
    tpu.enqueue_dma source(%10 : memref<256xf32, #tpu.memory_space<any>>) target(%12 : memref<256xf32, #tpu.memory_space<vmem>>) target_semaphore(%14 : memref<!tpu.dma_semaphore, #tpu.memory_space<semaphore_mem>>)
    %15 = arith.addi %1, %3 : i32
    %c1_i32 = arith.constant 1 : i32
    %16 = arith.addi %15, %c1_i32 : i32
    %17 = arith.index_cast %16 : i32 to index
    %18 = memref.load %arg1[%17] : memref<8xi32, #tpu.memory_space<smem>>
    %c1_i32_9 = arith.constant 1 : i32
    %19 = arith.addi %3, %c1_i32_9 : i32
    %c0_i32_10 = arith.constant 0 : i32
    %c0_i32_11 = arith.constant 0 : i32
    %c0_i32_12 = arith.constant 0 : i32
    %20 = tpu.memref_slice %arg2[%18, %c0_i32_12] : memref<10x256xf32, #tpu.memory_space<any>> -> memref<1x256xf32, #tpu.memory_space<any>>
    %21 = tpu.memref_squeeze %20 : memref<1x256xf32, #tpu.memory_space<any>> -> memref<256xf32, #tpu.memory_space<any>>
    %c0_i32_13 = arith.constant 0 : i32
    %22 = tpu.memref_slice %arg5[%c0_i32_10, %19, %c0_i32_13] : memref<2x8x256xf32, #tpu.memory_space<vmem>> -> memref<1x1x256xf32, #tpu.memory_space<vmem>>
    %23 = tpu.memref_squeeze %22 : memref<1x1x256xf32, #tpu.memory_space<vmem>> -> memref<256xf32, #tpu.memory_space<vmem>>
    %24 = tpu.memref_slice %arg6[%c0_i32_11] : memref<2x!tpu.dma_semaphore, #tpu.memory_space<semaphore_mem>> -> memref<1x!tpu.dma_semaphore, #tpu.memory_space<semaphore_mem>>
    %25 = tpu.memref_squeeze %24 : memref<1x!tpu.dma_semaphore, #tpu.memory_space<semaphore_mem>> -> memref<!tpu.dma_semaphore, #tpu.memory_space<semaphore_mem>>
    tpu.enqueue_dma source(%21 : memref<256xf32, #tpu.memory_space<any>>) target(%23 : memref<256xf32, #tpu.memory_space<vmem>>) target_semaphore(%25 : memref<!tpu.dma_semaphore, #tpu.memory_space<semaphore_mem>>)
    %26 = arith.addi %1, %3 : i32
    %c2_i32 = arith.constant 2 : i32
    %27 = arith.addi %26, %c2_i32 : i32
    %28 = arith.index_cast %27 : i32 to index
    %29 = memref.load %arg1[%28] : memref<8xi32, #tpu.memory_space<smem>>
    %c2_i32_14 = arith.constant 2 : i32
    %30 = arith.addi %3, %c2_i32_14 : i32
    %c0_i32_15 = arith.constant 0 : i32
    %c0_i32_16 = arith.constant 0 : i32
    %c0_i32_17 = arith.constant 0 : i32
    %31 = tpu.memref_slice %arg2[%29, %c0_i32_17] : memref<10x256xf32, #tpu.memory_space<any>> -> memref<1x256xf32, #tpu.memory_space<any>>
    %32 = tpu.memref_squeeze %31 : memref<1x256xf32, #tpu.memory_space<any>> -> memref<256xf32, #tpu.memory_space<any>>
    %c0_i32_18 = arith.constant 0 : i32
    %33 = tpu.memref_slice %arg5[%c0_i32_15, %30, %c0_i32_18] : memref<2x8x256xf32, #tpu.memory_space<vmem>> -> memref<1x1x256xf32, #tpu.memory_space<vmem>>
    %34 = tpu.memref_squeeze %33 : memref<1x1x256xf32, #tpu.memory_space<vmem>> -> memref<256xf32, #tpu.memory_space<vmem>>
    %35 = tpu.memref_slice %arg6[%c0_i32_16] : memref<2x!tpu.dma_semaphore, #tpu.memory_space<semaphore_mem>> -> memref<1x!tpu.dma_semaphore, #tpu.memory_space<semaphore_mem>>
    %36 = tpu.memref_squeeze %35 : memref<1x!tpu.dma_semaphore, #tpu.memory_space<semaphore_mem>> -> memref<!tpu.dma_semaphore, #tpu.memory_space<semaphore_mem>>
    tpu.enqueue_dma source(%32 : memref<256xf32, #tpu.memory_space<any>>) target(%34 : memref<256xf32, #tpu.memory_space<vmem>>) target_semaphore(%36 : memref<!tpu.dma_semaphore, #tpu.memory_space<semaphore_mem>>)
    %37 = arith.addi %1, %3 : i32
    %c3_i32 = arith.constant 3 : i32
    %38 = arith.addi %37, %c3_i32 : i32
    %39 = arith.index_cast %38 : i32 to index
    %40 = memref.load %arg1[%39] : memref<8xi32, #tpu.memory_space<smem>>
    %c3_i32_19 = arith.constant 3 : i32
    %41 = arith.addi %3, %c3_i32_19 : i32
    %c0_i32_20 = arith.constant 0 : i32
    %c0_i32_21 = arith.constant 0 : i32
    %c0_i32_22 = arith.constant 0 : i32
    %42 = tpu.memref_slice %arg2[%40, %c0_i32_22] : memref<10x256xf32, #tpu.memory_space<any>> -> memref<1x256xf32, #tpu.memory_space<any>>
    %43 = tpu.memref_squeeze %42 : memref<1x256xf32, #tpu.memory_space<any>> -> memref<256xf32, #tpu.memory_space<any>>
    %c0_i32_23 = arith.constant 0 : i32
    %44 = tpu.memref_slice %arg5[%c0_i32_20, %41, %c0_i32_23] : memref<2x8x256xf32, #tpu.memory_space<vmem>> -> memref<1x1x256xf32, #tpu.memory_space<vmem>>
    %45 = tpu.memref_squeeze %44 : memref<1x1x256xf32, #tpu.memory_space<vmem>> -> memref<256xf32, #tpu.memory_space<vmem>>
    %46 = tpu.memref_slice %arg6[%c0_i32_21] : memref<2x!tpu.dma_semaphore, #tpu.memory_space<semaphore_mem>> -> memref<1x!tpu.dma_semaphore, #tpu.memory_space<semaphore_mem>>
    %47 = tpu.memref_squeeze %46 : memref<1x!tpu.dma_semaphore, #tpu.memory_space<semaphore_mem>> -> memref<!tpu.dma_semaphore, #tpu.memory_space<semaphore_mem>>
    tpu.enqueue_dma source(%43 : memref<256xf32, #tpu.memory_space<any>>) target(%45 : memref<256xf32, #tpu.memory_space<vmem>>) target_semaphore(%47 : memref<!tpu.dma_semaphore, #tpu.memory_space<semaphore_mem>>)
    %48 = arith.addi %1, %3 : i32
    %c4_i32 = arith.constant 4 : i32
    %49 = arith.addi %48, %c4_i32 : i32
    %50 = arith.index_cast %49 : i32 to index
    %51 = memref.load %arg1[%50] : memref<8xi32, #tpu.memory_space<smem>>
    %c4_i32_24 = arith.constant 4 : i32
    %52 = arith.addi %3, %c4_i32_24 : i32
    %c0_i32_25 = arith.constant 0 : i32
    %c0_i32_26 = arith.constant 0 : i32
    %c0_i32_27 = arith.constant 0 : i32
    %53 = tpu.memref_slice %arg2[%51, %c0_i32_27] : memref<10x256xf32, #tpu.memory_space<any>> -> memref<1x256xf32, #tpu.memory_space<any>>
    %54 = tpu.memref_squeeze %53 : memref<1x256xf32, #tpu.memory_space<any>> -> memref<256xf32, #tpu.memory_space<any>>
    %c0_i32_28 = arith.constant 0 : i32
    %55 = tpu.memref_slice %arg5[%c0_i32_25, %52, %c0_i32_28] : memref<2x8x256xf32, #tpu.memory_space<vmem>> -> memref<1x1x256xf32, #tpu.memory_space<vmem>>
    %56 = tpu.memref_squeeze %55 : memref<1x1x256xf32, #tpu.memory_space<vmem>> -> memref<256xf32, #tpu.memory_space<vmem>>
    %57 = tpu.memref_slice %arg6[%c0_i32_26] : memref<2x!tpu.dma_semaphore, #tpu.memory_space<semaphore_mem>> -> memref<1x!tpu.dma_semaphore, #tpu.memory_space<semaphore_mem>>
    %58 = tpu.memref_squeeze %57 : memref<1x!tpu.dma_semaphore, #tpu.memory_space<semaphore_mem>> -> memref<!tpu.dma_semaphore, #tpu.memory_space<semaphore_mem>>
    tpu.enqueue_dma source(%54 : memref<256xf32, #tpu.memory_space<any>>) target(%56 : memref<256xf32, #tpu.memory_space<vmem>>) target_semaphore(%58 : memref<!tpu.dma_semaphore, #tpu.memory_space<semaphore_mem>>)
    %59 = arith.addi %1, %3 : i32
    %c5_i32 = arith.constant 5 : i32
    %60 = arith.addi %59, %c5_i32 : i32
    %61 = arith.index_cast %60 : i32 to index
    %62 = memref.load %arg1[%61] : memref<8xi32, #tpu.memory_space<smem>>
    %c5_i32_29 = arith.constant 5 : i32
    %63 = arith.addi %3, %c5_i32_29 : i32
    %c0_i32_30 = arith.constant 0 : i32
    %c0_i32_31 = arith.constant 0 : i32
    %c0_i32_32 = arith.constant 0 : i32
    %64 = tpu.memref_slice %arg2[%62, %c0_i32_32] : memref<10x256xf32, #tpu.memory_space<any>> -> memref<1x256xf32, #tpu.memory_space<any>>
    %65 = tpu.memref_squeeze %64 : memref<1x256xf32, #tpu.memory_space<any>> -> memref<256xf32, #tpu.memory_space<any>>
    %c0_i32_33 = arith.constant 0 : i32
    %66 = tpu.memref_slice %arg5[%c0_i32_30, %63, %c0_i32_33] : memref<2x8x256xf32, #tpu.memory_space<vmem>> -> memref<1x1x256xf32, #tpu.memory_space<vmem>>
    %67 = tpu.memref_squeeze %66 : memref<1x1x256xf32, #tpu.memory_space<vmem>> -> memref<256xf32, #tpu.memory_space<vmem>>
    %68 = tpu.memref_slice %arg6[%c0_i32_31] : memref<2x!tpu.dma_semaphore, #tpu.memory_space<semaphore_mem>> -> memref<1x!tpu.dma_semaphore, #tpu.memory_space<semaphore_mem>>
    %69 = tpu.memref_squeeze %68 : memref<1x!tpu.dma_semaphore, #tpu.memory_space<semaphore_mem>> -> memref<!tpu.dma_semaphore, #tpu.memory_space<semaphore_mem>>
    tpu.enqueue_dma source(%65 : memref<256xf32, #tpu.memory_space<any>>) target(%67 : memref<256xf32, #tpu.memory_space<vmem>>) target_semaphore(%69 : memref<!tpu.dma_semaphore, #tpu.memory_space<semaphore_mem>>)
    %70 = arith.addi %1, %3 : i32
    %c6_i32 = arith.constant 6 : i32
    %71 = arith.addi %70, %c6_i32 : i32
    %72 = arith.index_cast %71 : i32 to index
    %73 = memref.load %arg1[%72] : memref<8xi32, #tpu.memory_space<smem>>
    %c6_i32_34 = arith.constant 6 : i32
    %74 = arith.addi %3, %c6_i32_34 : i32
    %c0_i32_35 = arith.constant 0 : i32
    %c0_i32_36 = arith.constant 0 : i32
    %c0_i32_37 = arith.constant 0 : i32
    %75 = tpu.memref_slice %arg2[%73, %c0_i32_37] : memref<10x256xf32, #tpu.memory_space<any>> -> memref<1x256xf32, #tpu.memory_space<any>>
    %76 = tpu.memref_squeeze %75 : memref<1x256xf32, #tpu.memory_space<any>> -> memref<256xf32, #tpu.memory_space<any>>
    %c0_i32_38 = arith.constant 0 : i32
    %77 = tpu.memref_slice %arg5[%c0_i32_35, %74, %c0_i32_38] : memref<2x8x256xf32, #tpu.memory_space<vmem>> -> memref<1x1x256xf32, #tpu.memory_space<vmem>>
    %78 = tpu.memref_squeeze %77 : memref<1x1x256xf32, #tpu.memory_space<vmem>> -> memref<256xf32, #tpu.memory_space<vmem>>
    %79 = tpu.memref_slice %arg6[%c0_i32_36] : memref<2x!tpu.dma_semaphore, #tpu.memory_space<semaphore_mem>> -> memref<1x!tpu.dma_semaphore, #tpu.memory_space<semaphore_mem>>
    %80 = tpu.memref_squeeze %79 : memref<1x!tpu.dma_semaphore, #tpu.memory_space<semaphore_mem>> -> memref<!tpu.dma_semaphore, #tpu.memory_space<semaphore_mem>>
    tpu.enqueue_dma source(%76 : memref<256xf32, #tpu.memory_space<any>>) target(%78 : memref<256xf32, #tpu.memory_space<vmem>>) target_semaphore(%80 : memref<!tpu.dma_semaphore, #tpu.memory_space<semaphore_mem>>)
    %81 = arith.addi %1, %3 : i32
    %c7_i32 = arith.constant 7 : i32
    %82 = arith.addi %81, %c7_i32 : i32
    %83 = arith.index_cast %82 : i32 to index
    %84 = memref.load %arg1[%83] : memref<8xi32, #tpu.memory_space<smem>>
    %c7_i32_39 = arith.constant 7 : i32
    %85 = arith.addi %3, %c7_i32_39 : i32
    %c0_i32_40 = arith.constant 0 : i32
    %c0_i32_41 = arith.constant 0 : i32
    %c0_i32_42 = arith.constant 0 : i32
    %86 = tpu.memref_slice %arg2[%84, %c0_i32_42] : memref<10x256xf32, #tpu.memory_space<any>> -> memref<1x256xf32, #tpu.memory_space<any>>
    %87 = tpu.memref_squeeze %86 : memref<1x256xf32, #tpu.memory_space<any>> -> memref<256xf32, #tpu.memory_space<any>>
    %c0_i32_43 = arith.constant 0 : i32
    %88 = tpu.memref_slice %arg5[%c0_i32_40, %85, %c0_i32_43] : memref<2x8x256xf32, #tpu.memory_space<vmem>> -> memref<1x1x256xf32, #tpu.memory_space<vmem>>
    %89 = tpu.memref_squeeze %88 : memref<1x1x256xf32, #tpu.memory_space<vmem>> -> memref<256xf32, #tpu.memory_space<vmem>>
    %90 = tpu.memref_slice %arg6[%c0_i32_41] : memref<2x!tpu.dma_semaphore, #tpu.memory_space<semaphore_mem>> -> memref<1x!tpu.dma_semaphore, #tpu.memory_space<semaphore_mem>>
    %91 = tpu.memref_squeeze %90 : memref<1x!tpu.dma_semaphore, #tpu.memory_space<semaphore_mem>> -> memref<!tpu.dma_semaphore, #tpu.memory_space<semaphore_mem>>
    tpu.enqueue_dma source(%87 : memref<256xf32, #tpu.memory_space<any>>) target(%89 : memref<256xf32, #tpu.memory_space<vmem>>) target_semaphore(%91 : memref<!tpu.dma_semaphore, #tpu.memory_space<semaphore_mem>>)
    %c1_i32_44 = arith.constant 1 : i32
    %c0_i32_45 = arith.constant 0 : i32
    %c8_i32_46 = arith.constant 8 : i32
    %92 = arith.muli %c0_i32_45, %c8_i32_46 : i32
    %c0_i32_47 = arith.constant 0 : i32
    %93 = arith.addi %c0_i32_47, %92 : i32
    %c0_i32_48 = arith.constant 0 : i32
    %94 = arith.addi %93, %c0_i32_48 : i32
    %c0_i32_49 = arith.constant 0 : i32
    %c0_i32_50 = arith.constant 0 : i32
    %c0_i32_51 = arith.constant 0 : i32
    %c0_i32_52 = arith.constant 0 : i32
    %95 = tpu.memref_slice %arg2[%c0_i32_49, %c0_i32_52] : memref<10x256xf32, #tpu.memory_space<any>> -> memref<1x256xf32, #tpu.memory_space<any>>
    %96 = tpu.memref_squeeze %95 : memref<1x256xf32, #tpu.memory_space<any>> -> memref<256xf32, #tpu.memory_space<any>>
    %c0_i32_53 = arith.constant 0 : i32
    %97 = tpu.memref_slice %arg5[%c0_i32_50, %94, %c0_i32_53] : memref<2x8x256xf32, #tpu.memory_space<vmem>> -> memref<1x1x256xf32, #tpu.memory_space<vmem>>
    %98 = tpu.memref_squeeze %97 : memref<1x1x256xf32, #tpu.memory_space<vmem>> -> memref<256xf32, #tpu.memory_space<vmem>>
    %99 = tpu.memref_slice %arg6[%c0_i32_51] : memref<2x!tpu.dma_semaphore, #tpu.memory_space<semaphore_mem>> -> memref<1x!tpu.dma_semaphore, #tpu.memory_space<semaphore_mem>>
    %100 = tpu.memref_squeeze %99 : memref<1x!tpu.dma_semaphore, #tpu.memory_space<semaphore_mem>> -> memref<!tpu.dma_semaphore, #tpu.memory_space<semaphore_mem>>
    tpu.wait_dma2 semaphore(%100 : memref<!tpu.dma_semaphore, #tpu.memory_space<semaphore_mem>>) src(%96 : memref<256xf32, #tpu.memory_space<any>>) dst(%98 : memref<256xf32, #tpu.memory_space<vmem>>)
    %c1_i32_54 = arith.constant 1 : i32
    %101 = arith.addi %93, %c1_i32_54 : i32
    %c0_i32_55 = arith.constant 0 : i32
    %c0_i32_56 = arith.constant 0 : i32
    %c0_i32_57 = arith.constant 0 : i32
    %c0_i32_58 = arith.constant 0 : i32
    %102 = tpu.memref_slice %arg2[%c0_i32_55, %c0_i32_58] : memref<10x256xf32, #tpu.memory_space<any>> -> memref<1x256xf32, #tpu.memory_space<any>>
    %103 = tpu.memref_squeeze %102 : memref<1x256xf32, #tpu.memory_space<any>> -> memref<256xf32, #tpu.memory_space<any>>
    %c0_i32_59 = arith.constant 0 : i32
    %104 = tpu.memref_slice %arg5[%c0_i32_56, %101, %c0_i32_59] : memref<2x8x256xf32, #tpu.memory_space<vmem>> -> memref<1x1x256xf32, #tpu.memory_space<vmem>>
    %105 = tpu.memref_squeeze %104 : memref<1x1x256xf32, #tpu.memory_space<vmem>> -> memref<256xf32, #tpu.memory_space<vmem>>
    %106 = tpu.memref_slice %arg6[%c0_i32_57] : memref<2x!tpu.dma_semaphore, #tpu.memory_space<semaphore_mem>> -> memref<1x!tpu.dma_semaphore, #tpu.memory_space<semaphore_mem>>
    %107 = tpu.memref_squeeze %106 : memref<1x!tpu.dma_semaphore, #tpu.memory_space<semaphore_mem>> -> memref<!tpu.dma_semaphore, #tpu.memory_space<semaphore_mem>>
    tpu.wait_dma2 semaphore(%107 : memref<!tpu.dma_semaphore, #tpu.memory_space<semaphore_mem>>) src(%103 : memref<256xf32, #tpu.memory_space<any>>) dst(%105 : memref<256xf32, #tpu.memory_space<vmem>>)
    %c2_i32_60 = arith.constant 2 : i32
    %108 = arith.addi %93, %c2_i32_60 : i32
    %c0_i32_61 = arith.constant 0 : i32
    %c0_i32_62 = arith.constant 0 : i32
    %c0_i32_63 = arith.constant 0 : i32
    %c0_i32_64 = arith.constant 0 : i32
    %109 = tpu.memref_slice %arg2[%c0_i32_61, %c0_i32_64] : memref<10x256xf32, #tpu.memory_space<any>> -> memref<1x256xf32, #tpu.memory_space<any>>
    %110 = tpu.memref_squeeze %109 : memref<1x256xf32, #tpu.memory_space<any>> -> memref<256xf32, #tpu.memory_space<any>>
    %c0_i32_65 = arith.constant 0 : i32
    %111 = tpu.memref_slice %arg5[%c0_i32_62, %108, %c0_i32_65] : memref<2x8x256xf32, #tpu.memory_space<vmem>> -> memref<1x1x256xf32, #tpu.memory_space<vmem>>
    %112 = tpu.memref_squeeze %111 : memref<1x1x256xf32, #tpu.memory_space<vmem>> -> memref<256xf32, #tpu.memory_space<vmem>>
    %113 = tpu.memref_slice %arg6[%c0_i32_63] : memref<2x!tpu.dma_semaphore, #tpu.memory_space<semaphore_mem>> -> memref<1x!tpu.dma_semaphore, #tpu.memory_space<semaphore_mem>>
    %114 = tpu.memref_squeeze %113 : memref<1x!tpu.dma_semaphore, #tpu.memory_space<semaphore_mem>> -> memref<!tpu.dma_semaphore, #tpu.memory_space<semaphore_mem>>
    tpu.wait_dma2 semaphore(%114 : memref<!tpu.dma_semaphore, #tpu.memory_space<semaphore_mem>>) src(%110 : memref<256xf32, #tpu.memory_space<any>>) dst(%112 : memref<256xf32, #tpu.memory_space<vmem>>)
    %c3_i32_66 = arith.constant 3 : i32
    %115 = arith.addi %93, %c3_i32_66 : i32
    %c0_i32_67 = arith.constant 0 : i32
    %c0_i32_68 = arith.constant 0 : i32
    %c0_i32_69 = arith.constant 0 : i32
    %c0_i32_70 = arith.constant 0 : i32
    %116 = tpu.memref_slice %arg2[%c0_i32_67, %c0_i32_70] : memref<10x256xf32, #tpu.memory_space<any>> -> memref<1x256xf32, #tpu.memory_space<any>>
    %117 = tpu.memref_squeeze %116 : memref<1x256xf32, #tpu.memory_space<any>> -> memref<256xf32, #tpu.memory_space<any>>
    %c0_i32_71 = arith.constant 0 : i32
    %118 = tpu.memref_slice %arg5[%c0_i32_68, %115, %c0_i32_71] : memref<2x8x256xf32, #tpu.memory_space<vmem>> -> memref<1x1x256xf32, #tpu.memory_space<vmem>>
    %119 = tpu.memref_squeeze %118 : memref<1x1x256xf32, #tpu.memory_space<vmem>> -> memref<256xf32, #tpu.memory_space<vmem>>
    %120 = tpu.memref_slice %arg6[%c0_i32_69] : memref<2x!tpu.dma_semaphore, #tpu.memory_space<semaphore_mem>> -> memref<1x!tpu.dma_semaphore, #tpu.memory_space<semaphore_mem>>
    %121 = tpu.memref_squeeze %120 : memref<1x!tpu.dma_semaphore, #tpu.memory_space<semaphore_mem>> -> memref<!tpu.dma_semaphore, #tpu.memory_space<semaphore_mem>>
    tpu.wait_dma2 semaphore(%121 : memref<!tpu.dma_semaphore, #tpu.memory_space<semaphore_mem>>) src(%117 : memref<256xf32, #tpu.memory_space<any>>) dst(%119 : memref<256xf32, #tpu.memory_space<vmem>>)
    %c4_i32_72 = arith.constant 4 : i32
    %122 = arith.addi %93, %c4_i32_72 : i32
    %c0_i32_73 = arith.constant 0 : i32
    %c0_i32_74 = arith.constant 0 : i32
    %c0_i32_75 = arith.constant 0 : i32
    %c0_i32_76 = arith.constant 0 : i32
    %123 = tpu.memref_slice %arg2[%c0_i32_73, %c0_i32_76] : memref<10x256xf32, #tpu.memory_space<any>> -> memref<1x256xf32, #tpu.memory_space<any>>
    %124 = tpu.memref_squeeze %123 : memref<1x256xf32, #tpu.memory_space<any>> -> memref<256xf32, #tpu.memory_space<any>>
    %c0_i32_77 = arith.constant 0 : i32
    %125 = tpu.memref_slice %arg5[%c0_i32_74, %122, %c0_i32_77] : memref<2x8x256xf32, #tpu.memory_space<vmem>> -> memref<1x1x256xf32, #tpu.memory_space<vmem>>
    %126 = tpu.memref_squeeze %125 : memref<1x1x256xf32, #tpu.memory_space<vmem>> -> memref<256xf32, #tpu.memory_space<vmem>>
    %127 = tpu.memref_slice %arg6[%c0_i32_75] : memref<2x!tpu.dma_semaphore, #tpu.memory_space<semaphore_mem>> -> memref<1x!tpu.dma_semaphore, #tpu.memory_space<semaphore_mem>>
    %128 = tpu.memref_squeeze %127 : memref<1x!tpu.dma_semaphore, #tpu.memory_space<semaphore_mem>> -> memref<!tpu.dma_semaphore, #tpu.memory_space<semaphore_mem>>
    tpu.wait_dma2 semaphore(%128 : memref<!tpu.dma_semaphore, #tpu.memory_space<semaphore_mem>>) src(%124 : memref<256xf32, #tpu.memory_space<any>>) dst(%126 : memref<256xf32, #tpu.memory_space<vmem>>)
    %c5_i32_78 = arith.constant 5 : i32
    %129 = arith.addi %93, %c5_i32_78 : i32
    %c0_i32_79 = arith.constant 0 : i32
    %c0_i32_80 = arith.constant 0 : i32
    %c0_i32_81 = arith.constant 0 : i32
    %c0_i32_82 = arith.constant 0 : i32
    %130 = tpu.memref_slice %arg2[%c0_i32_79, %c0_i32_82] : memref<10x256xf32, #tpu.memory_space<any>> -> memref<1x256xf32, #tpu.memory_space<any>>
    %131 = tpu.memref_squeeze %130 : memref<1x256xf32, #tpu.memory_space<any>> -> memref<256xf32, #tpu.memory_space<any>>
    %c0_i32_83 = arith.constant 0 : i32
    %132 = tpu.memref_slice %arg5[%c0_i32_80, %129, %c0_i32_83] : memref<2x8x256xf32, #tpu.memory_space<vmem>> -> memref<1x1x256xf32, #tpu.memory_space<vmem>>
    %133 = tpu.memref_squeeze %132 : memref<1x1x256xf32, #tpu.memory_space<vmem>> -> memref<256xf32, #tpu.memory_space<vmem>>
    %134 = tpu.memref_slice %arg6[%c0_i32_81] : memref<2x!tpu.dma_semaphore, #tpu.memory_space<semaphore_mem>> -> memref<1x!tpu.dma_semaphore, #tpu.memory_space<semaphore_mem>>
    %135 = tpu.memref_squeeze %134 : memref<1x!tpu.dma_semaphore, #tpu.memory_space<semaphore_mem>> -> memref<!tpu.dma_semaphore, #tpu.memory_space<semaphore_mem>>
    tpu.wait_dma2 semaphore(%135 : memref<!tpu.dma_semaphore, #tpu.memory_space<semaphore_mem>>) src(%131 : memref<256xf32, #tpu.memory_space<any>>) dst(%133 : memref<256xf32, #tpu.memory_space<vmem>>)
    %c6_i32_84 = arith.constant 6 : i32
    %136 = arith.addi %93, %c6_i32_84 : i32
    %c0_i32_85 = arith.constant 0 : i32
    %c0_i32_86 = arith.constant 0 : i32
    %c0_i32_87 = arith.constant 0 : i32
    %c0_i32_88 = arith.constant 0 : i32
    %137 = tpu.memref_slice %arg2[%c0_i32_85, %c0_i32_88] : memref<10x256xf32, #tpu.memory_space<any>> -> memref<1x256xf32, #tpu.memory_space<any>>
    %138 = tpu.memref_squeeze %137 : memref<1x256xf32, #tpu.memory_space<any>> -> memref<256xf32, #tpu.memory_space<any>>
    %c0_i32_89 = arith.constant 0 : i32
    %139 = tpu.memref_slice %arg5[%c0_i32_86, %136, %c0_i32_89] : memref<2x8x256xf32, #tpu.memory_space<vmem>> -> memref<1x1x256xf32, #tpu.memory_space<vmem>>
    %140 = tpu.memref_squeeze %139 : memref<1x1x256xf32, #tpu.memory_space<vmem>> -> memref<256xf32, #tpu.memory_space<vmem>>
    %141 = tpu.memref_slice %arg6[%c0_i32_87] : memref<2x!tpu.dma_semaphore, #tpu.memory_space<semaphore_mem>> -> memref<1x!tpu.dma_semaphore, #tpu.memory_space<semaphore_mem>>
    %142 = tpu.memref_squeeze %141 : memref<1x!tpu.dma_semaphore, #tpu.memory_space<semaphore_mem>> -> memref<!tpu.dma_semaphore, #tpu.memory_space<semaphore_mem>>
    tpu.wait_dma2 semaphore(%142 : memref<!tpu.dma_semaphore, #tpu.memory_space<semaphore_mem>>) src(%138 : memref<256xf32, #tpu.memory_space<any>>) dst(%140 : memref<256xf32, #tpu.memory_space<vmem>>)
    %c7_i32_90 = arith.constant 7 : i32
    %143 = arith.addi %93, %c7_i32_90 : i32
    %c0_i32_91 = arith.constant 0 : i32
    %c0_i32_92 = arith.constant 0 : i32
    %c0_i32_93 = arith.constant 0 : i32
    %c0_i32_94 = arith.constant 0 : i32
    %144 = tpu.memref_slice %arg2[%c0_i32_91, %c0_i32_94] : memref<10x256xf32, #tpu.memory_space<any>> -> memref<1x256xf32, #tpu.memory_space<any>>
    %145 = tpu.memref_squeeze %144 : memref<1x256xf32, #tpu.memory_space<any>> -> memref<256xf32, #tpu.memory_space<any>>
    %c0_i32_95 = arith.constant 0 : i32
    %146 = tpu.memref_slice %arg5[%c0_i32_92, %143, %c0_i32_95] : memref<2x8x256xf32, #tpu.memory_space<vmem>> -> memref<1x1x256xf32, #tpu.memory_space<vmem>>
    %147 = tpu.memref_squeeze %146 : memref<1x1x256xf32, #tpu.memory_space<vmem>> -> memref<256xf32, #tpu.memory_space<vmem>>
    %148 = tpu.memref_slice %arg6[%c0_i32_93] : memref<2x!tpu.dma_semaphore, #tpu.memory_space<semaphore_mem>> -> memref<1x!tpu.dma_semaphore, #tpu.memory_space<semaphore_mem>>
    %149 = tpu.memref_squeeze %148 : memref<1x!tpu.dma_semaphore, #tpu.memory_space<semaphore_mem>> -> memref<!tpu.dma_semaphore, #tpu.memory_space<semaphore_mem>>
    tpu.wait_dma2 semaphore(%149 : memref<!tpu.dma_semaphore, #tpu.memory_space<semaphore_mem>>) src(%145 : memref<256xf32, #tpu.memory_space<any>>) dst(%147 : memref<256xf32, #tpu.memory_space<vmem>>)
    %c1_i32_96 = arith.constant 1 : i32
    %c0 = arith.constant 0 : index
    %c0_97 = arith.constant 0 : index
    %150 = vector.load %arg3[%c0, %c0_97] : memref<8x32xf32, #tpu.memory_space<vmem>>, vector<8x32xf32>
    %c0_98 = arith.constant 0 : index
    %c0_99 = arith.constant 0 : index
    %c0_100 = arith.constant 0 : index
    %151 = vector.load %arg5[%c0_98, %c0_99, %c0_100] : memref<2x8x256xf32, #tpu.memory_space<vmem>>, vector<1x8x256xf32>
    %152 = vector.shape_cast %151 : vector<1x8x256xf32> to vector<8x256xf32>
    %153 = vector.extract_strided_slice %152 {offsets = [0, 0], sizes = [8, 128], strides = [1, 1]} : vector<8x256xf32> to vector<8x128xf32>
    %154 = vector.extract_strided_slice %152 {offsets = [0, 128], sizes = [8, 128], strides = [1, 1]} : vector<8x256xf32> to vector<8x128xf32>
    %155 = vector.extract_strided_slice %154 {offsets = [0, 0], sizes = [8, 32], strides = [1, 1]} : vector<8x128xf32> to vector<8x32xf32>
    %156 = arith.mulf %155, %150 : vector<8x32xf32>
    %cst = arith.constant dense<0.000000e+00> : vector<8xf32>
    %157 = vector.multi_reduction <add>, %156, %cst [1] : vector<8x32xf32> to vector<8xf32>
    %158 = vector.shape_cast %157 : vector<8xf32> to vector<8x1xf32>
    %159 = vector.extract_strided_slice %154 {offsets = [0, 32], sizes = [8, 32], strides = [1, 1]} : vector<8x128xf32> to vector<8x32xf32>
    %160 = arith.mulf %159, %150 : vector<8x32xf32>
    %cst_101 = arith.constant dense<0.000000e+00> : vector<8xf32>
    %161 = vector.multi_reduction <add>, %160, %cst_101 [1] : vector<8x32xf32> to vector<8xf32>
    %162 = vector.shape_cast %161 : vector<8xf32> to vector<8x1xf32>
    %163 = vector.extract_strided_slice %154 {offsets = [0, 64], sizes = [8, 32], strides = [1, 1]} : vector<8x128xf32> to vector<8x32xf32>
    %164 = arith.mulf %163, %150 : vector<8x32xf32>
    %cst_102 = arith.constant dense<0.000000e+00> : vector<8xf32>
    %165 = vector.multi_reduction <add>, %164, %cst_102 [1] : vector<8x32xf32> to vector<8xf32>
    %166 = vector.shape_cast %165 : vector<8xf32> to vector<8x1xf32>
    %167 = vector.extract_strided_slice %154 {offsets = [0, 96], sizes = [8, 32], strides = [1, 1]} : vector<8x128xf32> to vector<8x32xf32>
    %168 = arith.mulf %167, %150 : vector<8x32xf32>
    %cst_103 = arith.constant dense<0.000000e+00> : vector<8xf32>
    %169 = vector.multi_reduction <add>, %168, %cst_103 [1] : vector<8x32xf32> to vector<8xf32>
    %170 = vector.shape_cast %169 : vector<8xf32> to vector<8x1xf32>
    %171 = vector.extract_strided_slice %153 {offsets = [0, 0], sizes = [8, 32], strides = [1, 1]} : vector<8x128xf32> to vector<8x32xf32>
    %172 = arith.mulf %171, %150 : vector<8x32xf32>
    %cst_104 = arith.constant dense<0.000000e+00> : vector<8xf32>
    %173 = vector.multi_reduction <add>, %172, %cst_104 [1] : vector<8x32xf32> to vector<8xf32>
    %174 = vector.shape_cast %173 : vector<8xf32> to vector<8x1xf32>
    %175 = vector.extract_strided_slice %153 {offsets = [0, 32], sizes = [8, 32], strides = [1, 1]} : vector<8x128xf32> to vector<8x32xf32>
    %176 = arith.mulf %175, %150 : vector<8x32xf32>
    %cst_105 = arith.constant dense<0.000000e+00> : vector<8xf32>
    %177 = vector.multi_reduction <add>, %176, %cst_105 [1] : vector<8x32xf32> to vector<8xf32>
    %178 = vector.shape_cast %177 : vector<8xf32> to vector<8x1xf32>
    %179 = vector.extract_strided_slice %153 {offsets = [0, 64], sizes = [8, 32], strides = [1, 1]} : vector<8x128xf32> to vector<8x32xf32>
    %180 = arith.mulf %179, %150 : vector<8x32xf32>
    %cst_106 = arith.constant dense<0.000000e+00> : vector<8xf32>
    %181 = vector.multi_reduction <add>, %180, %cst_106 [1] : vector<8x32xf32> to vector<8xf32>
    %182 = vector.shape_cast %181 : vector<8xf32> to vector<8x1xf32>
    %183 = vector.extract_strided_slice %153 {offsets = [0, 96], sizes = [8, 32], strides = [1, 1]} : vector<8x128xf32> to vector<8x32xf32>
    %184 = arith.mulf %183, %150 : vector<8x32xf32>
    %cst_107 = arith.constant dense<0.000000e+00> : vector<8xf32>
    %185 = vector.multi_reduction <add>, %184, %cst_107 [1] : vector<8x32xf32> to vector<8xf32>
    %186 = vector.shape_cast %185 : vector<8xf32> to vector<8x1xf32>
    %187 = arith.maximumf %158, %162 : vector<8x1xf32>
    %188 = arith.maximumf %187, %166 : vector<8x1xf32>
    %189 = arith.maximumf %188, %170 : vector<8x1xf32>
    %cst_108 = arith.constant 0.000000e+00 : f32
    %190 = vector.broadcast %cst_108 : f32 to vector<8x1xf32>
    %cst_109 = arith.constant 0.000000e+00 : f32
    %191 = vector.broadcast %cst_109 : f32 to vector<8x1xf32>
    %192 = arith.subf %158, %189 : vector<8x1xf32>
    %193 = math.exp %192 : vector<8x1xf32>
    %194 = arith.addf %191, %193 : vector<8x1xf32>
    %195 = arith.mulf %193, %174 : vector<8x1xf32>
    %196 = arith.addf %190, %195 : vector<8x1xf32>
    %197 = arith.subf %162, %189 : vector<8x1xf32>
    %198 = math.exp %197 : vector<8x1xf32>
    %199 = arith.addf %194, %198 : vector<8x1xf32>
    %200 = arith.mulf %198, %178 : vector<8x1xf32>
    %201 = arith.addf %196, %200 : vector<8x1xf32>
    %202 = arith.subf %166, %189 : vector<8x1xf32>
    %203 = math.exp %202 : vector<8x1xf32>
    %204 = arith.addf %199, %203 : vector<8x1xf32>
    %205 = arith.mulf %203, %182 : vector<8x1xf32>
    %206 = arith.addf %201, %205 : vector<8x1xf32>
    %207 = arith.subf %170, %189 : vector<8x1xf32>
    %208 = math.exp %207 : vector<8x1xf32>
    %209 = arith.addf %204, %208 : vector<8x1xf32>
    %210 = arith.mulf %208, %186 : vector<8x1xf32>
    %211 = arith.addf %206, %210 : vector<8x1xf32>
    %212 = arith.divf %211, %209 : vector<8x1xf32>
    %c0_110 = arith.constant 0 : index
    %c0_111 = arith.constant 0 : index
    %213 = vector.load %arg4[%c0_110, %c0_111] : memref<8x1xf32, #tpu.memory_space<vmem>>, vector<8x1xf32>
    tpu.vector_store %arg4[%c0_110, %c0_111], %212 {strides = array<i32>} : memref<8x1xf32, #tpu.memory_space<vmem>>, vector<8x1xf32>,
    return
  }
  func.func @transform_1(%arg0: i32, %arg1: memref<8xi32, #tpu.memory_space<smem>>) -> (i32, i32) {
    %c0_i32 = arith.constant 0 : i32
    %c0_i32_0 = arith.constant 0 : i32
    return %arg0, %c0_i32 : i32, i32
  }
  func.func @transform_2(%arg0: i32, %arg1: memref<8xi32, #tpu.memory_space<smem>>) -> (i32, i32) {
    %c0_i32 = arith.constant 0 : i32
    %c0_i32_0 = arith.constant 0 : i32
    return %arg0, %c0_i32 : i32, i32
  }
}

</mosaic_0001>

<bundles_post_ra>
// kernel: tpu_custom_call.1
= control target key start
LH: loop header
LB: loop body
LE: loop exit
PB: predicated region body
PF: predicated region fallthrough
CT: control target
= control target key end

     0   :  { %s607_s15 = smov [#allocation5]   ;;  %s791_s0 = inlined_call_operand.hbm [shape: s32[8], index: 0, kind: input, shape index: {}]   ;;  %s792_s1 = inlined_call_operand.hbm [shape: f32[10,256], index: 1, kind: input, shape index: {}]   ;;  %s793_s2 = inlined_call_operand.hbm [shape: f32[8,32], index: 2, kind: input, shape index: {}]   ;;  %s794_s3 = inlined_call_operand.vmem [shape: f32[8,1], index: 3, kind: output, shape index: {}]  }
   0x1   :  { %s9_s14 = sshll.u32 %s791_s0, 4  ;;  %s10_s14 = int_to_ptr.hbm [resolvable:$true] %s9_s14 }
   0x2   :  { %12 = dma.hbm_to_smem %s10_s14, 16, %s607_s15, [#allocation4] }
   0x3   :  { %601 = dma.done.wait [#allocation4], 16 }
   0x4   :  { %602 = vsyncadd [#allocation4], 4294967280 }
   0x5   :  { %15 = sfence }
   0x6   :  { %16 = vsyncpa [#allocation7], 0  ;;  %s22_s18 = sshll.u32 %s793_s2, 4  ;;  %s608_s19 = smov [#allocation6]   ;;  %s23_s18 = int_to_ptr.hbm [resolvable:$true] %s22_s18 }
   0x7   :  { %s24_s20 = sshll.u32 %s608_s19, 4  ;;  %s25_s20 = int_to_ptr.vmem [resolvable:$true] %s24_s20 }
   0x8   :  { %27 = dma.hbm_to_vmem [thread:$0]  %s23_s18, 128, %s25_s20, [#allocation7]  }
   0x9   :  { %603 = dma.done.wait [#allocation7], 128  }
   0xa   :  { %604 = vsyncadd [#allocation7], 4294967168  ;;  %s33_s21 = sld [smem:[#allocation5]]  ;;  %s609_s0 = smov [#allocation2]  }
   0xb   :  { %s648_s22 = sshll.u32 %s609_s0, 4  ;;  %s332_s23 = sld [smem:[#allocation5 + $0x1]]  ;;  %s42_s22 = int_to_ptr.vmem [resolvable:$true] %s648_s22 }
   0xc   :  { %s610_s24 = smov [#allocation2 + $0x1]   ;;  %s653_s26 = sld [smem:[#allocation5 + $0x2]] }
   0xd   :  { %s651_s25 = sshll.u32 %s610_s24, 4  ;;  %s611_s2 = smov [#allocation2 + $0x2]   ;;  %s58_s25 = int_to_ptr.vmem [resolvable:$true] %s651_s25 }
   0xe   :  { %s656_s27 = sshll.u32 %s611_s2, 4  ;;  %s658_s28 = sld [smem:[#allocation5 + $0x3]]  ;;  %s74_s27 = int_to_ptr.vmem [resolvable:$true] %s656_s27 }
   0xf   :  { %s667_s18 = scalar_lea.hbm %s792_s1, 32 }
  0x10   :  { %s34_s29 = sshrl.u32 %s33_s21, 3  ;;  %s35_s30 = sand.u32 7, %s33_s21  }
  0x11   :  { %s331_s4 = sshll.u32 %s34_s29, 4  ;;  %s49_s6 = sshrl.u32 %s332_s23, 3 }
  0x12   :  { %s37_s5 = sadd.s32 %s331_s4, %s35_s30  ;;  %s50_s10 = sand.u32 7, %s332_s23  }
  0x13   :  { %s38_s9 = scalar_lea.hbm %s792_s1, %s37_s5  ;;  %s333_s12 = sshll.u32 %s49_s6, 4 }
  0x14   :  { %s39_s11 = sshll.u32 %s38_s9, 4  ;;  %s52_s13 = sadd.s32 %s333_s12, %s50_s10  ;;  %s40_s11 = int_to_ptr.hbm [resolvable:$true] %s39_s11 }
  0x15   :  { %s409_s14 = sshra.s32 %s40_s11, 4  ;;  %s410_s14 = int_to_ptr.hbm [resolvable:$true] %s409_s14 }
  0x16   :  { %s411_s15 = scalar_lea.hbm %s410_s14, 2  ;;  %p414_p1 = scmp.lt.s32.totalorder %s410_s14, %s792_s1 }
  0x17   :  { %p412_p0 = scmp.ne.s32.totalorder %s410_s14, %s411_s15  ;;  %p415_p2 = scmp.lt.s32.totalorder %s667_s18, %s411_s15 }
  0x19   :  { %p416_p3 = por %p415_p2, %p414_p1 }
  0x1b   :  { %p417_p4 = pnand %p416_p3, %p412_p0 }
  0x1d   :  { %420 = shalt.err (!%p417_p4)  }
  0x1e   :  { %s612_s21 = smov 128   ;;  %s613_s0 = smov 1  }
  0x1f   :  { %46 = dma.hbm_to_vmem [thread:$0]  %s40_s11, 32, %s42_s22, [#allocation3], %s612_s21, %s612_s21, %s613_s0 }
  0x20   :  { %s53_s2 = scalar_lea.hbm %s792_s1, %s52_s13  ;;  %s65_s29 = sshrl.u32 %s653_s26, 3 }
  0x21   :  { %s55_s30 = sshll.u32 %s53_s2, 4  ;;  %s66_s4 = sand.u32 7, %s653_s26   ;;  %s56_s30 = int_to_ptr.hbm [resolvable:$true] %s55_s30 }
  0x22   :  { %s335_s5 = sshll.u32 %s65_s29, 4  ;;  %s433_s6 = sshra.s32 %s56_s30, 4  ;;  %s434_s6 = int_to_ptr.hbm [resolvable:$true] %s433_s6 }
  0x23   :  { %s435_s7 = scalar_lea.hbm %s434_s6, 2  ;;  %p438_p6 = scmp.lt.s32.totalorder %s434_s6, %s792_s1 }
  0x24   :  { %p436_p5 = scmp.ne.s32.totalorder %s434_s6, %s435_s7  ;;  %p439_p7 = scmp.lt.s32.totalorder %s667_s18, %s435_s7 }
  0x26   :  { %p440_p8 = por %p439_p7, %p438_p6 }
  0x28   :  { %p441_p9 = pnand %p440_p8, %p436_p5 }
  0x2a   :  { %444 = shalt.err (!%p441_p9)  }
  0x2b   :  { %62 = dma.hbm_to_vmem [thread:$0]  %s56_s30, 32, %s58_s25, [#allocation3], %s612_s21, %s612_s21, %s613_s0 }
  0x2c   :  { %s68_s22 = sadd.s32 %s335_s5, %s66_s4  ;;  %s81_s26 = sshrl.u32 %s658_s28, 3 }
  0x2d   :  { %s69_s12 = scalar_lea.hbm %s792_s1, %s68_s22  ;;  %s82_s13 = sand.u32 7, %s658_s28  }
  0x2e   :  { %s71_s14 = sshll.u32 %s69_s12, 4  ;;  %s337_s15 = sshll.u32 %s81_s26, 4  ;;  %s72_s14 = int_to_ptr.hbm [resolvable:$true] %s71_s14 }
  0x2f   :  { %s84_s16 = sadd.s32 %s337_s15, %s82_s13  ;;  %s457_s17 = sshra.s32 %s72_s14, 4  ;;  %s458_s17 = int_to_ptr.hbm [resolvable:$true] %s457_s17 }
  0x30   :  { %s459_s19 = scalar_lea.hbm %s458_s17, 2  ;;  %p462_p11 = scmp.lt.s32.totalorder %s458_s17, %s792_s1 }
  0x31   :  { %p460_p10 = scmp.ne.s32.totalorder %s458_s17, %s459_s19  ;;  %p463_p12 = scmp.lt.s32.totalorder %s667_s18, %s459_s19 }
  0x33   :  { %p464_p13 = por %p463_p12, %p462_p11 }
  0x35   :  { %p465_p0 = pnand %p464_p13, %p460_p10 }
  0x37   :  { %468 = shalt.err (!%p465_p0)  }
  0x38   :  { %78 = dma.hbm_to_vmem [thread:$0]  %s72_s14, 32, %s74_s27, [#allocation3], %s612_s21, %s612_s21, %s613_s0 }
  0x39   :  { %s85_s24 = scalar_lea.hbm %s792_s1, %s84_s16  ;;  %s614_s29 = smov [#allocation2 + $0x3]  }
  0x3a   :  { %s87_s2 = sshll.u32 %s85_s24, 4  ;;  %s89_s30 = sshll.u32 %s614_s29, 4  ;;  %s88_s2 = int_to_ptr.hbm [resolvable:$true] %s87_s2  ;;  %s90_s30 = int_to_ptr.vmem [resolvable:$true] %s89_s30 }
  0x3b   :  { %s481_s4 = sshra.s32 %s88_s2, 4  ;;  %s482_s4 = int_to_ptr.hbm [resolvable:$true] %s481_s4 }
  0x3c   :  { %s483_s5 = scalar_lea.hbm %s482_s4, 2  ;;  %p486_p2 = scmp.lt.s32.totalorder %s482_s4, %s792_s1 }
  0x3d   :  { %p484_p1 = scmp.ne.s32.totalorder %s482_s4, %s483_s5  ;;  %p487_p3 = scmp.lt.s32.totalorder %s667_s18, %s483_s5 }
  0x3f   :  { %p488_p4 = por %p487_p3, %p486_p2 }
  0x41   :  { %p489_p5 = pnand %p488_p4, %p484_p1 }
  0x43   :  { %492 = shalt.err (!%p489_p5)  }
  0x44   :  { %94 = dma.hbm_to_vmem [thread:$0]  %s88_s2, 32, %s90_s30, [#allocation3], %s612_s21, %s612_s21, %s613_s0 }
  0x45   :  { %s338_s27 = sld [smem:[#allocation5 + $0x4]]  ;;  %s615_s8 = smov [#allocation2 + $0x4]  }
  0x46   :  { %s716_s9 = sshll.u32 %s615_s8, 4  ;;  %s340_s22 = sld [smem:[#allocation5 + $0x5]]  ;;  %s106_s9 = int_to_ptr.vmem [resolvable:$true] %s716_s9 }
  0x47   :  { %s616_s26 = smov [#allocation2 + $0x5]   ;;  %s721_s11 = sld [smem:[#allocation5 + $0x6]] }
  0x48   :  { %s719_s10 = sshll.u32 %s616_s26, 4  ;;  %s617_s12 = smov [#allocation2 + $0x6]   ;;  %s122_s10 = int_to_ptr.vmem [resolvable:$true] %s719_s10 }
  0x49   :  { %s724_s13 = sshll.u32 %s617_s12, 4  ;;  %s726_s14 = sld [smem:[#allocation5 + $0x7]]  ;;  %s138_s13 = int_to_ptr.vmem [resolvable:$true] %s724_s13 }
  0x4b   :  { %s97_s15 = sshrl.u32 %s338_s27, 3  ;;  %s98_s16 = sand.u32 7, %s338_s27  }
  0x4c   :  { %s339_s17 = sshll.u32 %s97_s15, 4  ;;  %s113_s19 = sshrl.u32 %s340_s22, 3 }
  0x4d   :  { %s100_s20 = sadd.s32 %s339_s17, %s98_s16  ;;  %s114_s23 = sand.u32 7, %s340_s22  }
  0x4e   :  { %s101_s24 = scalar_lea.hbm %s792_s1, %s100_s20  ;;  %s341_s2 = sshll.u32 %s113_s19, 4 }
  0x4f   :  { %s103_s29 = sshll.u32 %s101_s24, 4  ;;  %s116_s30 = sadd.s32 %s341_s2, %s114_s23  ;;  %s104_s29 = int_to_ptr.hbm [resolvable:$true] %s103_s29 }
  0x50   :  { %s117_s6 = scalar_lea.hbm %s792_s1, %s116_s30  ;;  %s505_s7 = sshra.s32 %s104_s29, 4  ;;  %s506_s7 = int_to_ptr.hbm [resolvable:$true] %s505_s7 }
  0x51   :  { %s507_s27 = scalar_lea.hbm %s506_s7, 2  ;;  %p510_p7 = scmp.lt.s32.totalorder %s506_s7, %s792_s1 }
  0x52   :  { %p508_p6 = scmp.ne.s32.totalorder %s506_s7, %s507_s27  ;;  %p511_p8 = scmp.lt.s32.totalorder %s667_s18, %s507_s27 }
  0x54   :  { %p512_p9 = por %p511_p8, %p510_p7 }
  0x56   :  { %p513_p10 = pnand %p512_p9, %p508_p6 }
  0x58   :  { %516 = shalt.err (!%p513_p10)  }
  0x59   :  { %110 = dma.hbm_to_vmem [thread:$0]  %s104_s29, 32, %s106_s9, [#allocation3], %s612_s21, %s612_s21, %s613_s0 }
  0x5a   :  { %s119_s22 = sshll.u32 %s117_s6, 4  ;;  %s129_s12 = sshrl.u32 %s721_s11, 3  ;;  %s120_s22 = int_to_ptr.hbm [resolvable:$true] %s119_s22 }
  0x5b   :  { %s130_s15 = sand.u32 7, %s721_s11   ;;  %s529_s16 = sshra.s32 %s120_s22, 4  ;;  %s530_s16 = int_to_ptr.hbm [resolvable:$true] %s529_s16 }
  0x5c   :  { %s531_s17 = scalar_lea.hbm %s530_s16, 2  ;;  %p534_p12 = scmp.lt.s32.totalorder %s530_s16, %s792_s1 }
  0x5d   :  { %p532_p11 = scmp.ne.s32.totalorder %s530_s16, %s531_s17  ;;  %p535_p13 = scmp.lt.s32.totalorder %s667_s18, %s531_s17 }
  0x5f   :  { %p536_p0 = por %p535_p13, %p534_p12 }
  0x61   :  { %p537_p1 = pnand %p536_p0, %p532_p11 }
  0x63   :  { %540 = shalt.err (!%p537_p1)  }
  0x64   :  { %126 = dma.hbm_to_vmem [thread:$0]  %s120_s22, 32, %s122_s10, [#allocation3], %s612_s21, %s612_s21, %s613_s0 }
  0x65   :  { %s343_s9 = sshll.u32 %s129_s12, 4  ;;  %s145_s23 = sshrl.u32 %s726_s14, 3 }
  0x66   :  { %s132_s11 = sadd.s32 %s343_s9, %s130_s15  ;;  %s146_s2 = sand.u32 7, %s726_s14  }
  0x67   :  { %s133_s24 = scalar_lea.hbm %s792_s1, %s132_s11  ;;  %s345_s30 = sshll.u32 %s145_s23, 4 }
  0x68   :  { %s135_s29 = sshll.u32 %s133_s24, 4  ;;  %s148_s4 = sadd.s32 %s345_s30, %s146_s2  ;;  %s136_s29 = int_to_ptr.hbm [resolvable:$true] %s135_s29 }
  0x69   :  { %s553_s5 = sshra.s32 %s136_s29, 4  ;;  %s554_s5 = int_to_ptr.hbm [resolvable:$true] %s553_s5 }
  0x6a   :  { %s555_s6 = scalar_lea.hbm %s554_s5, 2  ;;  %p558_p3 = scmp.lt.s32.totalorder %s554_s5, %s792_s1 }
  0x6b   :  { %p556_p2 = scmp.ne.s32.totalorder %s554_s5, %s555_s6  ;;  %p559_p4 = scmp.lt.s32.totalorder %s667_s18, %s555_s6 }
  0x6d   :  { %p560_p5 = por %p559_p4, %p558_p3 }
  0x6f   :  { %p561_p6 = pnand %p560_p5, %p556_p2 }
  0x71   :  { %564 = shalt.err (!%p561_p6)  }
  0x72   :  { %142 = dma.hbm_to_vmem [thread:$0]  %s136_s29, 32, %s138_s13, [#allocation3], %s612_s21, %s612_s21, %s613_s0 }
  0x73   :  { %s149_s8 = scalar_lea.hbm %s792_s1, %s148_s4  ;;  %s618_s22 = smov [#allocation2 + $0x7]  }
  0x74   :  { %s151_s26 = sshll.u32 %s149_s8, 4  ;;  %s153_s12 = sshll.u32 %s618_s22, 4  ;;  %s152_s26 = int_to_ptr.hbm [resolvable:$true] %s151_s26  ;;  %s154_s12 = int_to_ptr.vmem [resolvable:$true] %s153_s12 }
  0x75   :  { %s577_s15 = sshra.s32 %s152_s26, 4  ;;  %s578_s15 = int_to_ptr.hbm [resolvable:$true] %s577_s15 }
  0x76   :  { %s579_s16 = scalar_lea.hbm %s578_s15, 2  ;;  %p582_p8 = scmp.lt.s32.totalorder %s578_s15, %s792_s1 }
  0x77   :  { %p580_p7 = scmp.ne.s32.totalorder %s578_s15, %s579_s16  ;;  %p583_p9 = scmp.lt.s32.totalorder %s667_s18, %s579_s16 }
  0x79   :  { %p584_p10 = por %p583_p9, %p582_p8 }
  0x7b   :  { %p585_p11 = pnand %p584_p10, %p580_p7 }
  0x7d   :  { %588 = shalt.err (!%p585_p11)  }
  0x7e   :  { %158 = dma.hbm_to_vmem [thread:$0]  %s152_s26, 32, %s154_s12, [#allocation3], %s612_s21, %s612_s21, %s613_s0 }
  0x7f   :  { %605 = dma.done.wait [#allocation3], 256 }
  0x80   :  { %606 = vsyncadd [#allocation3], 4294967040  ;;  %v175_v0 = vld [vmem:[#allocation6] sm:$0xff]  ;;  %s619_s13 = smov 96   ;;  %s620_s20 = smov 32   ;;  %v177_v1 = vld [vmem:[#allocation2 + $0x8] sm:$0xff] }
  0x81   :  { %206 = vrot.lane.b32.xlu1 %v175_v0, %s619_s13  ;;  %184 = vrot.lane.b32.xlu0 %v175_v0, %s620_s20  ;;  %s621_s9 = smov 64   ;;  %v178_v2 = vmul.f32 %v177_v1, %v175_v0  ;;  %vm179_vm0 = vcmask 261120   ;;  %v176_v4 = vld [vmem:[#allocation2] sm:$0xff]  ;;  %vm287_vm5 = vcmask 7168  }
  0x82   :  { %v217_v21 = vmul.f32 %v176_v4, %v175_v0 }
  0x83   :  { %v180_v3 = vsel %vm179_vm0, %v178_v2, 0.0 }
  0x84   :  { %v218_v22 = vsel %vm179_vm0, %v217_v21, 0.0 }
  0x89   :  { %195 = vrot.lane.b32.xlu0 %v175_v0, %s621_s9 }
  0xab   :  { %181 = vadd.xlane.f32.xlu1 %v180_v3 }
  0xf3   :  { %v207_v5 = vpop.permute.xlu1 %206  ;;  %v185_v6 = vpop.permute.xlu0 %184 }
  0xf4   :  { %v209_v7 = vmul.f32 %v207_v5, %v177_v1  ;;  %v221_v8 = vmul.f32 %v185_v6, %v176_v4  ;;  %v187_v9 = vmul.f32 %v185_v6, %v177_v1  ;;  %v237_v19 = vmul.f32 %v207_v5, %v176_v4 }
  0xf6   :  { %211 = vrot.lane.b32.xlu0 %v209_v7, %s620_s20  ;;  %189 = vrot.lane.b32.xlu2 %v187_v9, %s619_s13 }
  0xf7   :  { %223 = vrot.lane.b32.xlu1 %v221_v8, %s619_s13 }
  0xfb   :  { %v196_v10 = vpop.permute.xlu0 %195 }
  0xfc   :  { %v198_v11 = vmul.f32 %v196_v10, %v177_v1  ;;  %v229_v16 = vmul.f32 %v196_v10, %v176_v4 }
  0xfe   :  { %200 = vrot.lane.b32.xlu2 %v198_v11, %s621_s9 }
 0x11e   :  { %v182_v20 = vpop.xlane.xlu1 %181 }
 0x150   :  { %v190_v12 = vpop.permute.xlu2 %189 }
 0x151   :  { %v192_v13 = vsel %vm179_vm0, %v190_v12, 0.0 }
 0x152   :  { %193 = vadd.xlane.f32.xlu2 %v192_v13 }
 0x158   :  { %v201_v14 = vpop.permute.xlu2 %200 }
 0x159   :  { %v203_v15 = vsel %vm179_vm0, %v201_v14, 0.0 }
 0x15a   :  { %204 = vadd.xlane.f32.xlu0 %v203_v15 }
 0x168   :  { %v212_v17 = vpop.permute.xlu0 %211 }
 0x169   :  { %v214_v18 = vsel %vm179_vm0, %v212_v17, 0.0  ;;  %v224_v23 = vpop.permute.xlu1 %223 }
 0x16a   :  { %231 = vrot.lane.b32.xlu2 %v229_v16, %s621_s9  ;;  %215 = vadd.xlane.f32.xlu1 %v214_v18  ;;  %v226_v24 = vsel %vm179_vm0, %v224_v23, 0.0 }
 0x16e   :  { %239 = vrot.lane.b32.xlu0 %v237_v19, %s620_s20 }
 0x193   :  { %219 = vadd.xlane.f32.xlu2 %v218_v22 }
 0x198   :  { %227 = vadd.xlane.f32.xlu0 %v226_v24 }
 0x1c5   :  { %v194_v25 = vpop.xlane.xlu2 %193 }
 0x1c6   :  { %v245_v26 = vmax.f32 %v182_v20, %v194_v25 }
 0x1cd   :  { %v232_v27 = vpop.permute.xlu2 %231  ;;  %v205_v28 = vpop.xlane.xlu0 %204 }
 0x1ce   :  { %v246_v29 = vmax.f32 %v245_v26, %v205_v28  ;;  %v234_v30 = vsel %vm179_vm0, %v232_v27, 0.0 }
 0x1cf   :  { %235 = vadd.xlane.f32.xlu1 %v234_v30 }
 0x1dd   :  { %v216_v31 = vpop.xlane.xlu1 %215 }
 0x1de   :  { %v247_v32 = vmax.f32 %v246_v29, %v216_v31 }
 0x1e0   :  { %v240_v33 = vpop.permute.xlu0 %239  ;;  %v248_v34 = vsub.f32 %v182_v20, %v247_v32  ;;  %v254_v35 = vsub.f32 %v194_v25, %v247_v32  ;;  %v260_v36 = vsub.f32 %v205_v28, %v247_v32  ;;  %v266_v38 = vsub.f32 %v216_v31, %v247_v32 }
 0x1e1   :  { %v242_v37 = vsel %vm179_vm0, %v240_v33, 0.0 }
 0x1e2   :  { %243 = vadd.xlane.f32.xlu2 %v242_v37  ;;  %v249_v39 = vmul.f32 1.442695, %v248_v34  ;;  %v255_v40 = vmul.f32 1.442695, %v254_v35  ;;  %v261_v41 = vmul.f32 1.442695, %v260_v36 }
 0x1e3   :  { %v267_v42 = vmul.f32 1.442695, %v266_v38 }
 0x1e4   :  { %363 = vpow2.f32 %v249_v39 }
 0x1e5   :  { %365 = vpow2.f32 %v255_v40 }
 0x1e6   :  { %367 = vpow2.f32 %v261_v41 }
 0x1e7   :  { %369 = vpow2.f32 %v267_v42 }
 0x1ea   :  { %v364_v43 = vpop.eup %363 }
 0x1eb   :  { %v366_v44 = vpop.eup %365 }
 0x1ec   :  { %v257_v45 = vadd.f32 %v366_v44, %v364_v43  ;;  %v368_v46 = vpop.eup %367 }
 0x1ed   :  { %v370_v48 = vpop.eup %369 }
 0x1ee   :  { %v263_v47 = vadd.f32 %v368_v46, %v257_v45 }
 0x1f0   :  { %v269_v49 = vadd.f32 %v370_v48, %v263_v47 }
 0x1f2   :  { %371 = vrcp.f32 %v269_v49  ;;  %v283_v63 = vand.u32 2147483648, %v269_v49  ;;  %vm277_vm2 = vweird.f32 %v269_v49  ;;  %v281_v0 = vand.u32 2147483647, %v269_v49 }
 0x1f4   :  { %v284_v4 = vor.u32 1.1754944e-38, %v283_v63  ;;  %vm282_vm4 = vcmp.eq.f32.partialorder %v281_v0, 8.507059e+37 }
 0x1f8   :  { %v372_v56 = vpop.eup %371 }
 0x1f9   :  { %v273_v59 = vmul.f32 %v372_v56, %v269_v49  ;;  %vm278_vm1 = vweird.f32 %v372_v56 }
 0x1fa   :  { %vm279_vm3 = vmor %vm277_vm2, %vm278_vm1 }
 0x1fb   :  { %v274_v60 = vsub.f32 1.0, %v273_v59 }
 0x1fd   :  { %v275_v61 = vmul.f32 %v372_v56, %v274_v60 }
 0x1ff   :  { %v276_v62 = vadd.f32 %v372_v56, %v275_v61 }
 0x201   :  { %v280_v3 = vsel %vm279_vm3, %v372_v56, %v276_v62 }
 0x202   :  { %v285_v6 = vsel %vm282_vm4, %v284_v4, %v280_v3 }
 0x206   :  { %v220_v50 = vpop.xlane.xlu2 %219 }
 0x207   :  { %v252_v52 = vmul.f32 %v364_v43, %v220_v50 }
 0x20b   :  { %v228_v51 = vpop.xlane.xlu0 %227 }
 0x20c   :  { %v258_v53 = vmul.f32 %v366_v44, %v228_v51 }
 0x20e   :  { %v259_v54 = vadd.f32 %v258_v53, %v252_v52 }
 0x242   :  { %v236_v55 = vpop.xlane.xlu1 %235 }
 0x243   :  { %v264_v57 = vmul.f32 %v368_v46, %v236_v55 }
 0x245   :  { %v265_v58 = vadd.f32 %v264_v57, %v259_v54 }
 0x255   :  { %v244_v1 = vpop.xlane.xlu2 %243 }
 0x256   :  { %v270_v2 = vmul.f32 %v370_v48, %v244_v1 }
 0x258   :  { %v271_v5 = vadd.f32 %v270_v2, %v265_v58 }
 0x25a   :  { %v286_v7 = vmul.f32 %v285_v6, %v271_v5 }
 0x25c   :  { %288 = vst.msk [vmem:[%s794_s3] sm:$0xff] %vm287_vm5, %v286_v7 }
 0x25d   :  { %293 = vsyncpa [#allocation7], 1 }
 0x25e   :  { %294 = vsyncmov [#allocation3] }
 0x261   :  { %s295_s21 = vpop.sfrf %294 }
 0x262   :  { %p346_p12 = scmp.ne.s32.totalorder %s295_s21, 0 }
 0x264   :  { %299 = shalt.err (%p346_p12)  }
 0x265   :  { %301 = vsyncmov [#allocation3 + $0x1] }
 0x268   :  { %s302_s0 = vpop.sfrf %301 }
 0x269   :  { %p347_p13 = scmp.ne.s32.totalorder %s302_s0, 0 }
 0x26b   :  { %306 = shalt.err (%p347_p13)  }

</bundles_post_ra>
